<compile_context>
chip_gen: v5e
topology: v5e:2x2
jax: 0.10.0
libtpu: 0.0.40
codegen_flags: <defaults>
</compile_context>

<pallas_src>
import jax
import jax.numpy as jnp
from jax import lax
from jax.experimental import pallas as pl
from jax.experimental.pallas import tpu as pltpu

# ---------------- problem sizes (small, consistent with the module) ----------
N = 2           # batch
S = 8           # sequence length
EMBED = 32      # embed_size
HEADS = 4
HEAD_DIM = EMBED // HEADS
SCALE = 1.0 / (float(EMBED) ** 0.5)   # module scales energy by 1/sqrt(embed_size)


def _mhsa_kernel(q_ref, k_ref, v_ref, wq_ref, wk_ref, wv_ref, wo_ref, bo_ref,
                 hmask_ref, bbias_ref, o_ref):
    f32, bf16 = jnp.float32, jnp.bfloat16
    ns = q_ref.shape[0]                      # N*S rows (batch folded into rows)

    # ---- Q/K/V projections: three (NS,E)@(E,E) bf16 MXU passes, f32 acc ----
    q = jnp.dot(q_ref[...].astype(bf16), wq_ref[...].astype(bf16),
                preferred_element_type=f32)                       # (NS, E)
    k = jnp.dot(k_ref[...].astype(bf16), wk_ref[...].astype(bf16),
                preferred_element_type=f32)                       # (NS, E)
    v = jnp.dot(v_ref[...].astype(bf16), wv_ref[...].astype(bf16),
                preferred_element_type=f32)                       # (NS, E)

    hmask = hmask_ref[...]                                        # (H*NS, E) 0/1 f32

    # ---- pack heads along sublanes: tile Q, zero non-own-head lanes --------
    q_tiled = jnp.concatenate([q] * HEADS, axis=0)                # (H*NS, E)
    q_packed = (q_tiled * hmask).astype(bf16)                     # (H*NS, E) bf16

    # ---- QK^T for all heads & batches in ONE MXU contraction ---------------
    # contract lanes of both operands ('rd,kd->rk'); Mosaic inserts at most one
    # internal K transpose (vs. H=4 per-head transposes before).
    energy = lax.dot_general(q_packed, k.astype(bf16),
                             dimension_numbers=(((1,), (1,)), ((), ())),
                             preferred_element_type=f32)          # (H*NS, NS)
    energy = energy * SCALE + bbias_ref[...]   # -1e30 on cross-batch entries

    # ---- one packed softmax pass, f32 math, exact divide --------------------
    energy = energy - jnp.max(energy, axis=-1, keepdims=True)
    p = jnp.exp(energy)
    p = p / jnp.sum(p, axis=-1, keepdims=True)                    # (H*NS, NS)

    # ---- P @ V for all heads & batches in ONE plain NN MXU pass -------------
    ctx = jnp.dot(p.astype(bf16), v.astype(bf16),
                  preferred_element_type=f32)                     # (H*NS, E)

    # ---- merge heads: keep each sublane block's own head lanes, sum blocks --
    ctx = ctx * hmask
    att = ctx[0:ns]
    for h in range(1, HEADS):
        att = att + ctx[h * ns:(h + 1) * ns]                      # (NS, E)

    # ---- fc_out (Linear with bias) ------------------------------------------
    out = jnp.dot(att.astype(bf16), wo_ref[...].astype(bf16),
                  preferred_element_type=f32) + bo_ref[...]
    o_ref[...] = out.astype(o_ref.dtype)


@jax.jit
def mhsa_pallas(queries, keys, values, wq, wk, wv, wo, bo):
    """queries/keys/values: (N, S, E) f32; wq/wk/wv/wo: (E_in, E_out); bo: (1, E)."""
    n, s, e = queries.shape
    ns = n * s
    rows = HEADS * ns

    # Metadata-only reshapes (no HBM traffic).
    q2 = queries.reshape(ns, e)
    k2 = keys.reshape(ns, e)
    v2 = values.reshape(ns, e)

    # Shape-only constants -> constant-folded by XLA at compile time.
    # head_mask[r, l] = 1 iff lane l belongs to the head of sublane-block r.
    head_of_row = (jnp.arange(rows) // ns)[:, None]
    head_of_lane = (jnp.arange(e) // HEAD_DIM)[None, :]
    head_mask = (head_of_row == head_of_lane).astype(jnp.float32)        # (H*NS, E)
    # batch_bias[r, c] = 0 if same batch element, else -1e30 (kills cross-batch
    # attention before the softmax).
    batch_of_row = ((jnp.arange(rows) % ns) // s)[:, None]
    batch_of_col = (jnp.arange(ns) // s)[None, :]
    batch_bias = jnp.where(batch_of_row == batch_of_col, 0.0, -1e30
                           ).astype(jnp.float32)                          # (H*NS, NS)

    out_flat = pl.pallas_call(
        _mhsa_kernel,
        out_shape=jax.ShapeDtypeStruct((ns, e), jnp.float32),
        grid_spec=pltpu.PrefetchScalarGridSpec(
            num_scalar_prefetch=0,
            grid=(1,),                                   # single step, both batches
            in_specs=[
                pl.BlockSpec((ns, e), lambda i: (0, 0)),        # queries rows
                pl.BlockSpec((ns, e), lambda i: (0, 0)),        # keys rows
                pl.BlockSpec((ns, e), lambda i: (0, 0)),        # values rows
                pl.BlockSpec((e, e), lambda i: (0, 0)),         # W_q
                pl.BlockSpec((e, e), lambda i: (0, 0)),         # W_k
                pl.BlockSpec((e, e), lambda i: (0, 0)),         # W_v
                pl.BlockSpec((e, e), lambda i: (0, 0)),         # W_o
                pl.BlockSpec((1, e), lambda i: (0, 0)),         # bias
                pl.BlockSpec((rows, e), lambda i: (0, 0)),      # head mask (const)
                pl.BlockSpec((rows, ns), lambda i: (0, 0)),     # batch bias (const)
            ],
            out_specs=pl.BlockSpec((ns, e), lambda i: (0, 0)),
        ),
        compiler_params=pltpu.CompilerParams(
            dimension_semantics=("arbitrary",)),
    )(q2, k2, v2, wq, wk, wv, wo, bo, head_mask, batch_bias)

    return out_flat.reshape(n, s, e)


def mhsa_reference(queries, keys, values, wq, wk, wv, wo, bo):
    """Pure-JAX f32 reference mirroring the PyTorch forward exactly."""
    n = queries.shape[0]
    q = (queries @ wq).reshape(n, -1, HEADS, HEAD_DIM)
    k = (keys @ wk).reshape(n, -1, HEADS, HEAD_DIM)
    v = (values @ wv).reshape(n, -1, HEADS, HEAD_DIM)
    energy = jnp.einsum('nqhd,nkhd->nhqk', q, k)
    attention = jax.nn.softmax(energy / (EMBED ** 0.5), axis=3)
    out = jnp.einsum('nhql,nlhd->nqhd', attention, v).reshape(n, -1, EMBED)
    return out @ wo + bo


if __name__ == "__main__":
    key = jax.random.PRNGKey(0)
    kq, kk, kv, kwq, kwk, kwv, kwo, kbo = jax.random.split(key, 8)

    # inputs: [N, S, E]
    queries = jax.random.normal(kq, (N, S, EMBED), dtype=jnp.float32)
    keys_in = jax.random.normal(kk, (N, S, EMBED), dtype=jnp.float32)
    values_in = jax.random.normal(kv, (N, S, EMBED), dtype=jnp.float32)

    # deterministic synthetic parameters, stored as [E_in, E_out]
    bound = 1.0 / (EMBED ** 0.5)
    wq = jax.random.uniform(kwq, (EMBED, EMBED), jnp.float32, -bound, bound)
    wk = jax.random.uniform(kwk, (EMBED, EMBED), jnp.float32, -bound, bound)
    wv = jax.random.uniform(kwv, (EMBED, EMBED), jnp.float32, -bound, bound)
    wo = jax.random.uniform(kwo, (EMBED, EMBED), jnp.float32, -bound, bound)
    bo = jax.random.uniform(kbo, (1, EMBED), jnp.float32, -bound, bound)

    out = mhsa_pallas(queries, keys_in, values_in, wq, wk, wv, wo, bo)
    out = jax.block_until_ready(out)

    ref = mhsa_reference(queries, keys_in, values_in, wq, wk, wv, wo, bo)
    assert out.shape == (N, S, EMBED)
    # bf16 MXU operands (f32 accumulate, exact softmax divide) => ~1e-2 level.
    assert jnp.allclose(out, ref, atol=3e-2, rtol=3e-2), \
        float(jnp.max(jnp.abs(out - ref)))

    print("KERNEL_OK")
</pallas_src>

<mosaic_0001>
module attributes {stable_mosaic.version = 11 : i64} {
  func.func @_mhsa_kernel(%arg0: i32, %arg1: memref<16x32xf32, #tpu.memory_space<vmem>>, %arg2: memref<16x32xf32, #tpu.memory_space<vmem>>, %arg3: memref<16x32xf32, #tpu.memory_space<vmem>>, %arg4: memref<32x32xf32, #tpu.memory_space<vmem>>, %arg5: memref<32x32xf32, #tpu.memory_space<vmem>>, %arg6: memref<32x32xf32, #tpu.memory_space<vmem>>, %arg7: memref<32x32xf32, #tpu.memory_space<vmem>>, %arg8: memref<1x32xf32, #tpu.memory_space<vmem>>, %arg9: memref<64x32xf32, #tpu.memory_space<vmem>>, %arg10: memref<64x16xf32, #tpu.memory_space<vmem>>, %arg11: memref<16x32xf32, #tpu.memory_space<vmem>>) attributes {dimension_semantics = [#tpu.dimension_semantics<arbitrary>], iteration_bounds = array<i64: 1>, scalar_prefetch = 0 : i64, scratch_operands = 0 : i64, tpu.core_type = #tpu.core_type<tc>, window_params = [{pipeline_mode = #tpu.pipeline_mode<synchronous>, transform_indices = @transform_0, window_bounds = array<i64: 16, 32>}, {pipeline_mode = #tpu.pipeline_mode<synchronous>, transform_indices = @transform_1, window_bounds = array<i64: 16, 32>}, {pipeline_mode = #tpu.pipeline_mode<synchronous>, transform_indices = @transform_2, window_bounds = array<i64: 16, 32>}, {pipeline_mode = #tpu.pipeline_mode<synchronous>, transform_indices = @transform_3, window_bounds = array<i64: 32, 32>}, {pipeline_mode = #tpu.pipeline_mode<synchronous>, transform_indices = @transform_4, window_bounds = array<i64: 32, 32>}, {pipeline_mode = #tpu.pipeline_mode<synchronous>, transform_indices = @transform_5, window_bounds = array<i64: 32, 32>}, {pipeline_mode = #tpu.pipeline_mode<synchronous>, transform_indices = @transform_6, window_bounds = array<i64: 32, 32>}, {pipeline_mode = #tpu.pipeline_mode<synchronous>, transform_indices = @transform_7, window_bounds = array<i64: 1, 32>}, {pipeline_mode = #tpu.pipeline_mode<synchronous>, transform_indices = @transform_8, window_bounds = array<i64: 64, 32>}, {pipeline_mode = #tpu.pipeline_mode<synchronous>, transform_indices = @transform_9, window_bounds = array<i64: 64, 16>}, {pipeline_mode = #tpu.pipeline_mode<synchronous>, transform_indices = @transform_10, window_bounds = array<i64: 16, 32>}]} {
    %c0 = arith.constant 0 : index
    %c0_0 = arith.constant 0 : index
    %0 = vector.load %arg1[%c0, %c0_0] : memref<16x32xf32, #tpu.memory_space<vmem>>, vector<16x32xf32>
    %1 = arith.truncf %0 : vector<16x32xf32> to vector<16x32xbf16>
    %c0_1 = arith.constant 0 : index
    %c0_2 = arith.constant 0 : index
    %2 = vector.load %arg4[%c0_1, %c0_2] : memref<32x32xf32, #tpu.memory_space<vmem>>, vector<32x32xf32>
    %3 = arith.truncf %2 : vector<32x32xf32> to vector<32x32xbf16>
    %cst = arith.constant dense<0.000000e+00> : vector<16x32xf32>
    %4 = tpu.matmul %1, %3, %cst {dimension_numbers = #tpu.dot_dimension_numbers<[1], [0], [0], [1], [0, 0, 1, 1], [], []>} : vector<16x32xbf16>, vector<32x32xbf16>, vector<16x32xf32> -> vector<16x32xf32>
    %c0_3 = arith.constant 0 : index
    %c0_4 = arith.constant 0 : index
    %5 = vector.load %arg2[%c0_3, %c0_4] : memref<16x32xf32, #tpu.memory_space<vmem>>, vector<16x32xf32>
    %6 = arith.truncf %5 : vector<16x32xf32> to vector<16x32xbf16>
    %c0_5 = arith.constant 0 : index
    %c0_6 = arith.constant 0 : index
    %7 = vector.load %arg5[%c0_5, %c0_6] : memref<32x32xf32, #tpu.memory_space<vmem>>, vector<32x32xf32>
    %8 = arith.truncf %7 : vector<32x32xf32> to vector<32x32xbf16>
    %cst_7 = arith.constant dense<0.000000e+00> : vector<16x32xf32>
    %9 = tpu.matmul %6, %8, %cst_7 {dimension_numbers = #tpu.dot_dimension_numbers<[1], [0], [0], [1], [0, 0, 1, 1], [], []>} : vector<16x32xbf16>, vector<32x32xbf16>, vector<16x32xf32> -> vector<16x32xf32>
    %c0_8 = arith.constant 0 : index
    %c0_9 = arith.constant 0 : index
    %10 = vector.load %arg3[%c0_8, %c0_9] : memref<16x32xf32, #tpu.memory_space<vmem>>, vector<16x32xf32>
    %11 = arith.truncf %10 : vector<16x32xf32> to vector<16x32xbf16>
    %c0_10 = arith.constant 0 : index
    %c0_11 = arith.constant 0 : index
    %12 = vector.load %arg6[%c0_10, %c0_11] : memref<32x32xf32, #tpu.memory_space<vmem>>, vector<32x32xf32>
    %13 = arith.truncf %12 : vector<32x32xf32> to vector<32x32xbf16>
    %cst_12 = arith.constant dense<0.000000e+00> : vector<16x32xf32>
    %14 = tpu.matmul %11, %13, %cst_12 {dimension_numbers = #tpu.dot_dimension_numbers<[1], [0], [0], [1], [0, 0, 1, 1], [], []>} : vector<16x32xbf16>, vector<32x32xbf16>, vector<16x32xf32> -> vector<16x32xf32>
    %c0_13 = arith.constant 0 : index
    %c0_14 = arith.constant 0 : index
    %15 = vector.load %arg9[%c0_13, %c0_14] : memref<64x32xf32, #tpu.memory_space<vmem>>, vector<64x32xf32>
    %16 = tpu.concatenate %4, %4, %4, %4 in 0 : vector<16x32xf32>, vector<16x32xf32>, vector<16x32xf32>, vector<16x32xf32> -> vector<64x32xf32>
    %17 = arith.mulf %16, %15 : vector<64x32xf32>
    %18 = arith.truncf %17 : vector<64x32xf32> to vector<64x32xbf16>
    %19 = arith.truncf %9 : vector<16x32xf32> to vector<16x32xbf16>
    %cst_15 = arith.constant dense<0.000000e+00> : vector<64x16xf32>
    %20 = tpu.matmul %18, %19, %cst_15 {dimension_numbers = #tpu.dot_dimension_numbers<[1], [1], [0], [0], [0, 0, 1, 0], [], []>} : vector<64x32xbf16>, vector<16x32xbf16>, vector<64x16xf32> -> vector<64x16xf32>
    %cst_16 = arith.constant 0.176776692 : f32
    %21 = vector.broadcast %cst_16 : f32 to vector<64x16xf32>
    %22 = arith.mulf %20, %21 : vector<64x16xf32>
    %c0_17 = arith.constant 0 : index
    %c0_18 = arith.constant 0 : index
    %23 = vector.load %arg10[%c0_17, %c0_18] : memref<64x16xf32, #tpu.memory_space<vmem>>, vector<64x16xf32>
    %24 = arith.addf %22, %23 : vector<64x16xf32>
    %cst_19 = arith.constant dense<0xFF800000> : vector<64xf32>
    %25 = vector.multi_reduction <maximumf>, %24, %cst_19 [1] : vector<64x16xf32> to vector<64xf32>
    %26 = vector.shape_cast %25 : vector<64xf32> to vector<64x1xf32>
    %27 = vector.broadcast %26 : vector<64x1xf32> to vector<64x16xf32>
    %28 = arith.subf %24, %27 : vector<64x16xf32>
    %29 = math.exp %28 : vector<64x16xf32>
    %cst_20 = arith.constant dense<0.000000e+00> : vector<64xf32>
    %30 = vector.multi_reduction <add>, %29, %cst_20 [1] : vector<64x16xf32> to vector<64xf32>
    %31 = vector.shape_cast %30 : vector<64xf32> to vector<64x1xf32>
    %32 = vector.broadcast %31 : vector<64x1xf32> to vector<64x16xf32>
    %33 = arith.divf %29, %32 : vector<64x16xf32>
    %34 = arith.truncf %33 : vector<64x16xf32> to vector<64x16xbf16>
    %35 = arith.truncf %14 : vector<16x32xf32> to vector<16x32xbf16>
    %cst_21 = arith.constant dense<0.000000e+00> : vector<64x32xf32>
    %36 = tpu.matmul %34, %35, %cst_21 {dimension_numbers = #tpu.dot_dimension_numbers<[1], [0], [0], [1], [0, 0, 1, 1], [], []>} : vector<64x16xbf16>, vector<16x32xbf16>, vector<64x32xf32> -> vector<64x32xf32>
    %37 = arith.mulf %36, %15 : vector<64x32xf32>
    %38 = vector.extract_strided_slice %37 {offsets = [0, 0], sizes = [16, 32], strides = [1, 1]} : vector<64x32xf32> to vector<16x32xf32>
    %39 = vector.extract_strided_slice %37 {offsets = [16, 0], sizes = [16, 32], strides = [1, 1]} : vector<64x32xf32> to vector<16x32xf32>
    %40 = arith.addf %38, %39 : vector<16x32xf32>
    %41 = vector.extract_strided_slice %37 {offsets = [32, 0], sizes = [16, 32], strides = [1, 1]} : vector<64x32xf32> to vector<16x32xf32>
    %42 = arith.addf %40, %41 : vector<16x32xf32>
    %43 = vector.extract_strided_slice %37 {offsets = [48, 0], sizes = [16, 32], strides = [1, 1]} : vector<64x32xf32> to vector<16x32xf32>
    %44 = arith.addf %42, %43 : vector<16x32xf32>
    %45 = arith.truncf %44 : vector<16x32xf32> to vector<16x32xbf16>
    %c0_22 = arith.constant 0 : index
    %c0_23 = arith.constant 0 : index
    %46 = vector.load %arg7[%c0_22, %c0_23] : memref<32x32xf32, #tpu.memory_space<vmem>>, vector<32x32xf32>
    %47 = arith.truncf %46 : vector<32x32xf32> to vector<32x32xbf16>
    %cst_24 = arith.constant dense<0.000000e+00> : vector<16x32xf32>
    %48 = tpu.matmul %45, %47, %cst_24 {dimension_numbers = #tpu.dot_dimension_numbers<[1], [0], [0], [1], [0, 0, 1, 1], [], []>} : vector<16x32xbf16>, vector<32x32xbf16>, vector<16x32xf32> -> vector<16x32xf32>
    %c0_25 = arith.constant 0 : index
    %c0_26 = arith.constant 0 : index
    %49 = vector.load %arg8[%c0_25, %c0_26] : memref<1x32xf32, #tpu.memory_space<vmem>>, vector<1x32xf32>
    %50 = vector.broadcast %49 : vector<1x32xf32> to vector<16x32xf32>
    %51 = arith.addf %48, %50 : vector<16x32xf32>
    %c0_27 = arith.constant 0 : index
    %c0_28 = arith.constant 0 : index
    %52 = vector.load %arg11[%c0_27, %c0_28] : memref<16x32xf32, #tpu.memory_space<vmem>>, vector<16x32xf32>
    tpu.vector_store %arg11[%c0_27, %c0_28], %51 {strides = array<i32>} : memref<16x32xf32, #tpu.memory_space<vmem>>, vector<16x32xf32>,
    return
  }
  func.func @transform_0(%arg0: i32) -> (i32, i32) {
    %c0_i32 = arith.constant 0 : i32
    %c0_i32_0 = arith.constant 0 : i32
    %c0_i32_1 = arith.constant 0 : i32
    return %c0_i32, %c0_i32_0 : i32, i32
  }
  func.func @transform_1(%arg0: i32) -> (i32, i32) {
    %c0_i32 = arith.constant 0 : i32
    %c0_i32_0 = arith.constant 0 : i32
    %c0_i32_1 = arith.constant 0 : i32
    return %c0_i32, %c0_i32_0 : i32, i32
  }
  func.func @transform_2(%arg0: i32) -> (i32, i32) {
    %c0_i32 = arith.constant 0 : i32
    %c0_i32_0 = arith.constant 0 : i32
    %c0_i32_1 = arith.constant 0 : i32
    return %c0_i32, %c0_i32_0 : i32, i32
  }
  func.func @transform_3(%arg0: i32) -> (i32, i32) {
    %c0_i32 = arith.constant 0 : i32
    %c0_i32_0 = arith.constant 0 : i32
    %c0_i32_1 = arith.constant 0 : i32
    return %c0_i32, %c0_i32_0 : i32, i32
  }
  func.func @transform_4(%arg0: i32) -> (i32, i32) {
    %c0_i32 = arith.constant 0 : i32
    %c0_i32_0 = arith.constant 0 : i32
    %c0_i32_1 = arith.constant 0 : i32
    return %c0_i32, %c0_i32_0 : i32, i32
  }
  func.func @transform_5(%arg0: i32) -> (i32, i32) {
    %c0_i32 = arith.constant 0 : i32
    %c0_i32_0 = arith.constant 0 : i32
    %c0_i32_1 = arith.constant 0 : i32
    return %c0_i32, %c0_i32_0 : i32, i32
  }
  func.func @transform_6(%arg0: i32) -> (i32, i32) {
    %c0_i32 = arith.constant 0 : i32
    %c0_i32_0 = arith.constant 0 : i32
    %c0_i32_1 = arith.constant 0 : i32
    return %c0_i32, %c0_i32_0 : i32, i32
  }
  func.func @transform_7(%arg0: i32) -> (i32, i32) {
    %c0_i32 = arith.constant 0 : i32
    %c0_i32_0 = arith.constant 0 : i32
    %c0_i32_1 = arith.constant 0 : i32
    return %c0_i32, %c0_i32_0 : i32, i32
  }
  func.func @transform_8(%arg0: i32) -> (i32, i32) {
    %c0_i32 = arith.constant 0 : i32
    %c0_i32_0 = arith.constant 0 : i32
    %c0_i32_1 = arith.constant 0 : i32
    return %c0_i32, %c0_i32_0 : i32, i32
  }
  func.func @transform_9(%arg0: i32) -> (i32, i32) {
    %c0_i32 = arith.constant 0 : i32
    %c0_i32_0 = arith.constant 0 : i32
    %c0_i32_1 = arith.constant 0 : i32
    return %c0_i32, %c0_i32_0 : i32, i32
  }
  func.func @transform_10(%arg0: i32) -> (i32, i32) {
    %c0_i32 = arith.constant 0 : i32
    %c0_i32_0 = arith.constant 0 : i32
    %c0_i32_1 = arith.constant 0 : i32
    return %c0_i32, %c0_i32_0 : i32, i32
  }
}

</mosaic_0001>

<bundles_post_ra>
// kernel: mhsa_pallas.1
= control target key start
LH: loop header
LB: loop body
LE: loop exit
PB: predicated region body
PF: predicated region fallthrough
CT: control target
= control target key end

     0   :  { %15 = vsyncpa [#allocation3], 0  ;;  %s1117_s0 = inlined_call_operand.hbm [shape: f32[16,32], index: 0, kind: input, shape index: {}]   ;;  %s1118_s1 = inlined_call_operand.hbm [shape: f32[16,32], index: 1, kind: input, shape index: {}]   ;;  %s1119_s2 = inlined_call_operand.hbm [shape: f32[16,32], index: 2, kind: input, shape index: {}]   ;;  %s1120_s3 = inlined_call_operand.vmem [shape: f32[32,32], index: 3, kind: input, shape index: {}]   ;;  %s1121_s4 = inlined_call_operand.vmem [shape: f32[32,32], index: 4, kind: input, shape index: {}]   ;;  %s1122_s5 = inlined_call_operand.vmem [shape: f32[32,32], index: 5, kind: input, shape index: {}]   ;;  %s1123_s6 = inlined_call_operand.vmem [shape: f32[32,32], index: 6, kind: input, shape index: {}]   ;;  %s1124_s7 = inlined_call_operand.vmem [shape: f32[1,32], index: 7, kind: input, shape index: {}]   ;;  %s1125_s8 = inlined_call_operand.vmem [shape: f32[64,32], index: 8, kind: input, shape index: {}]   ;;  %s1126_s9 = inlined_call_operand.vmem [shape: f32[64,16], index: 9, kind: input, shape index: {}]   ;;  %s1127_s10 = inlined_call_operand.hbm [shape: f32[16,32], index: 10, kind: output, shape index: {}]  }
   0x1   :  { %16 = vsyncpa [#allocation6], 0 }
   0x2   :  { %17 = vsyncpa [#allocation4], 0  ;;  %s35_s15 = sshll.u32 %s1118_s1, 4  ;;  %s710_s16 = smov [#allocation5]   ;;  %s36_s15 = int_to_ptr.hbm [resolvable:$true] %s35_s15 }
   0x3   :  { %s37_s17 = sshll.u32 %s710_s16, 4  ;;  %s22_s20 = sshll.u32 %s1117_s0, 4  ;;  %s38_s17 = int_to_ptr.vmem [resolvable:$true] %s37_s17  ;;  %s23_s20 = int_to_ptr.hbm [resolvable:$true] %s22_s20 }
   0x4   :  { %s711_s21 = smov 128   ;;  %s712_s22 = smov 8  }
   0x5   :  { %43 = dma.hbm_to_vmem [thread:$0]  %s36_s15, 256, %s38_s17, [#allocation6], %s711_s21, %s711_s21, %s712_s22  }
   0x6   :  { %s713_s23 = smov [#allocation2]   ;;  %s48_s1 = sshll.u32 %s1119_s2, 4  ;;  %s49_s1 = int_to_ptr.hbm [resolvable:$true] %s48_s1 }
   0x7   :  { %s24_s24 = sshll.u32 %s713_s23, 4  ;;  %s714_s0 = smov [#allocation7]   ;;  %s25_s24 = int_to_ptr.vmem [resolvable:$true] %s24_s24 }
   0x8   :  { %30 = dma.hbm_to_vmem [thread:$0]  %s23_s20, 256, %s25_s24, [#allocation3], %s711_s21, %s711_s21, %s712_s22  }
   0x9   :  { %s50_s27 = sshll.u32 %s714_s0, 4  ;;  %s51_s27 = int_to_ptr.vmem [resolvable:$true] %s50_s27 }
   0xa   :  { %56 = dma.hbm_to_vmem [thread:$0]  %s49_s1, 256, %s51_s27, [#allocation6], %s711_s21, %s711_s21, %s712_s22  }
   0xb   :  { %704 = dma.done.wait [#allocation3], 256  }
   0xc   :  { %705 = vsyncadd [#allocation3], 4294967040 }
   0xd   :  { %706 = dma.done.wait [#allocation6], 512  }
   0xe   :  { %707 = vsyncadd [#allocation6], 4294966784  ;;  %v89_v0 = vld [vmem:[%s1120_s3 + $0x10] sm:$0xff]  ;;  %v90_v1 = vld [vmem:[%s1120_s3 + $0x18] sm:$0xff]  ;;  %vm93_vm0 = vcmask 261120   ;;  %vm252_vm1 = vcmask 130048  }
   0xf   :  { %v116_v2 = vld [vmem:[%s1121_s4 + $0x10] sm:$0xff]  ;;  %v92_v3 = vpack.c.bf16 %v90_v1, %v89_v0  ;;  %v117_v4 = vld [vmem:[%s1121_s4 + $0x18] sm:$0xff]  ;;  %v87_v5 = vld [vmem:[%s1120_s3] sm:$0xff]  ;;  %s715_s24 = smov [#allocation8]   ;;  %s541_s26 = sshll.u32 %s1127_s10, 4  ;;  %s542_s26 = int_to_ptr.hbm [resolvable:$true] %s541_s26 }
  0x10   :  { %v88_v6 = vld [vmem:[%s1120_s3 + $0x8] sm:$0xff]  ;;  %v119_v7 = vpack.c.bf16 %v117_v4, %v116_v2  ;;  %v114_v8 = vld [vmem:[%s1121_s4] sm:$0xff]  ;;  %v111_v14 = vld [vmem:[#allocation5] sm:$0xff]  ;;  %s539_s3 = sshll.u32 %s715_s24, 4  ;;  %s540_s3 = int_to_ptr.vmem [resolvable:$true] %s539_s3 }
  0x11   :  { %v115_v9 = vld [vmem:[%s1121_s4 + $0x8] sm:$0xff]  ;;  %103 = vmatpush.bf16.msra.mxu0 %v92_v3  ;;  %v91_v10 = vpack.c.bf16 %v88_v6, %v87_v5  ;;  %v84_v11 = vld [vmem:[#allocation2] sm:$0xff]  ;;  %v112_v15 = vld [vmem:[#allocation5 + $0x8] sm:$0xff] }
  0x12   :  { %v85_v12 = vld [vmem:[#allocation2 + $0x8] sm:$0xff]  ;;  %129 = vmatpush.bf16.msra.mxu1 %v119_v7  ;;  %v118_v13 = vpack.c.bf16 %v115_v9, %v114_v8  ;;  %v113_v17 = vpack.c.bf16 %v112_v15, %v111_v14  ;;  %v823_v24 = vld [vmem:[%s1125_s8 + $0x18] sm:$0xff]  ;;  %v829_v26 = vld [vmem:[%s1125_s8] sm:$0xff] }
  0x13   :  { %v86_v16 = vpack.c.bf16 %v85_v12, %v84_v11  ;;  %v818_v23 = vld [vmem:[%s1125_s8 + $0x8] sm:$0xff]  ;;  %v834_v27 = vld [vmem:[%s1125_s8 + $0x10] sm:$0xff]  ;;  %v850_v35 = vld [vmem:[%s1125_s8 + $0x20] sm:$0xff] }
  0x14   :  { %v845_v34 = vld [vmem:[%s1125_s8 + $0x28] sm:$0xff]  ;;  %v858_v39 = vld [vmem:[%s1125_s8 + $0x38] sm:$0xff]  ;;  %v863_v40 = vld [vmem:[%s1125_s8 + $0x30] sm:$0xff] }
  0x15   :  { %104 = vmatpush.bf16.msra.mxu0 %v91_v10  ;;  %v236_v45 = vld [vmem:[%s1126_s9] sm:$0xff]  ;;  %v237_v51 = vld [vmem:[%s1126_s9 + $0x8] sm:$0xff]  ;;  %v239_v56 = vld [vmem:[%s1126_s9 + $0x18] sm:$0xff] }
  0x16   :  { %130 = vmatpush.bf16.msra.mxu1 %v118_v13  ;;  %v240_v61 = vld [vmem:[%s1126_s9 + $0x20] sm:$0xff]  ;;  %v241_v2 = vld [vmem:[%s1126_s9 + $0x28] sm:$0xff]  ;;  %v238_v7 = vld [vmem:[%s1126_s9 + $0x10] sm:$0xff] }
  0x17   :  { %v242_v9 = vld [vmem:[%s1126_s9 + $0x30] sm:$0xff] }
  0x18   :  { %555 = vmatmul.msk.bf16.vlgmr.msra.gmra.mxu0 %vm93_vm0, %v86_v16  ;;  %v243_v16 = vld [vmem:[%s1126_s9 + $0x38] sm:$0xff] }
  0x19   :  { %556 = vmatmul.msk.bf16.vlgmr.msra.gmra.mxu1 %vm93_vm0, %v113_v17 }
  0x95   :  { %v106_v18 = vpop.f32.mrf.mxu0 }
  0x96   :  { %v132_v19 = vpop.f32.mrf.mxu1  ;;  %v171_v30 = vmul.f32 %v829_v26, %v106_v18  ;;  %v173_v31 = vmul.f32 %v834_v27, %v106_v18  ;;  %v175_v37 = vmul.f32 %v850_v35, %v106_v18  ;;  %v177_v42 = vmul.f32 %v863_v40, %v106_v18 }
  0x9d   :  { %v108_v22 = vpop.f32.mrf.mxu0 }
  0x9e   :  { %v134_v20 = vpop.f32.mrf.mxu1  ;;  %v172_v28 = vmul.f32 %v818_v23, %v108_v22  ;;  %v174_v29 = vmul.f32 %v823_v24, %v108_v22  ;;  %v176_v36 = vmul.f32 %v845_v34, %v108_v22  ;;  %v178_v41 = vmul.f32 %v858_v39, %v108_v22 }
  0x9f   :  { %v183_v21 = vpack.c.bf16 %v134_v20, %v132_v19  ;;  %v142_v20 = vld [vmem:[%s1122_s5 + $0x10] sm:$0xff] }
  0xa0   :  { %v179_v32 = vpack.c.bf16 %v172_v28, %v171_v30  ;;  %v180_v33 = vpack.c.bf16 %v174_v29, %v173_v31  ;;  %v181_v38 = vpack.c.bf16 %v176_v36, %v175_v37  ;;  %v182_v43 = vpack.c.bf16 %v178_v41, %v177_v42  ;;  %v141_v28 = vld [vmem:[%s1122_s5 + $0x8] sm:$0xff]  ;;  %v137_v29 = vld [vmem:[#allocation7] sm:$0xff] }
  0xa1   :  { %v197_v25 = vsel %vm93_vm0, %v183_v21, 0  ;;  %v143_v21 = vld [vmem:[%s1122_s5 + $0x18] sm:$0xff]  ;;  %v138_v31 = vld [vmem:[#allocation7 + $0x8] sm:$0xff] }
  0xa2   :  { %206 = vmatpush.bf16.xpose.msrb.mxu1 %v197_v25  ;;  %567 = vmatpush.bf16.xpose.msra.mxu3 %v197_v25  ;;  %v145_v22 = vpack.c.bf16 %v143_v21, %v142_v20  ;;  %v140_v25 = vld [vmem:[%s1122_s5] sm:$0xff] }
  0xa3   :  { %v144_v30 = vpack.c.bf16 %v141_v28, %v140_v25 }
  0xa4   :  { %155 = vmatpush.bf16.msra.mxu2 %v145_v22 }
  0xa8   :  { %156 = vmatpush.bf16.msra.mxu2 %v144_v30 }
  0xa9   :  { %558 = vmatmul.msk.bf16.vlgmr.msrb.gmra.mxu1 %vm93_vm0, %v179_v32  ;;  %559 = vmatmul.msk.bf16.vlgmr.msra.gmra.mxu3 %vm93_vm0, %v180_v33  ;;  %v139_v32 = vpack.c.bf16 %v138_v31, %v137_v29 }
  0xab   :  { %557 = vmatmul.msk.bf16.vlgmr.msra.gmra.mxu2 %vm93_vm0, %v139_v32 }
  0xb9   :  { %560 = vmatmul.msk.bf16.gmra.mxu3 %vm93_vm0, %v181_v38 }
  0xc9   :  { %561 = vmatmul.msk.bf16.gmra.mxu3 %vm93_vm0, %v182_v43 }
 0x126   :  { %v208_v44 = vpop.f32.mrf.mxu1 }
 0x127   :  { %v228_v46 = vmul.f32 0.17677669, %v208_v44 }
 0x129   :  { %v244_v47 = vadd.f32 %v236_v45, %v228_v46 }
 0x12b   :  { %v253_v48 = vsel %vm252_vm1, %v244_v47, -inf }
 0x12c   :  { %v213_v49 = vpop.f32.mrf.mxu3  ;;  %254 = vmax.xlane.f32.xlu1 %v253_v48 }
 0x12d   :  { %v230_v5 = vmul.f32 0.17677669, %v213_v49 }
 0x12e   :  { %v210_v50 = vpop.f32.mrf.mxu1 }
 0x12f   :  { %v229_v52 = vmul.f32 0.17677669, %v210_v50  ;;  %v246_v11 = vadd.f32 %v238_v7, %v230_v5 }
 0x131   :  { %v875_v53 = vadd.f32 %v237_v51, %v229_v52  ;;  %v259_v13 = vsel %vm252_vm1, %v246_v11, -inf }
 0x133   :  { %v256_v54 = vsel %vm252_vm1, %v875_v53, -inf }
 0x134   :  { %v215_v55 = vpop.f32.mrf.mxu3  ;;  %257 = vmax.xlane.f32.xlu1 %v256_v54 }
 0x135   :  { %v231_v57 = vmul.f32 0.17677669, %v215_v55 }
 0x137   :  { %v882_v58 = vadd.f32 %v239_v56, %v231_v57 }
 0x139   :  { %v262_v59 = vsel %vm252_vm1, %v882_v58, -inf }
 0x13c   :  { %v218_v60 = vpop.f32.mrf.mxu3  ;;  %263 = vmax.xlane.f32.xlu1 %v262_v59 }
 0x13d   :  { %v232_v62 = vmul.f32 0.17677669, %v218_v60 }
 0x13f   :  { %v248_v63 = vadd.f32 %v240_v61, %v232_v62 }
 0x141   :  { %v265_v0 = vsel %vm252_vm1, %v248_v63, -inf }
 0x142   :  { %266 = vmax.xlane.f32.xlu0 %v265_v0 }
 0x144   :  { %v220_v1 = vpop.f32.mrf.mxu3 }
 0x145   :  { %v233_v3 = vmul.f32 0.17677669, %v220_v1 }
 0x147   :  { %v249_v4 = vadd.f32 %v241_v2, %v233_v3 }
 0x149   :  { %v268_v6 = vsel %vm252_vm1, %v249_v4, -inf }
 0x14a   :  { %269 = vmax.xlane.f32.xlu0 %v268_v6 }
 0x14c   :  { %v223_v8 = vpop.f32.mrf.mxu3 }
 0x14d   :  { %v234_v10 = vmul.f32 0.17677669, %v223_v8 }
 0x14f   :  { %v250_v12 = vadd.f32 %v242_v9, %v234_v10 }
 0x151   :  { %v271_v14 = vsel %vm252_vm1, %v250_v12, -inf }
 0x152   :  { %260 = vmax.xlane.f32.xlu0 %v259_v13  ;;  %272 = vmax.xlane.f32.xlu2 %v271_v14  ;;  %v158_v13 = vpop.f32.mrf.mxu2 }
 0x154   :  { %v225_v15 = vpop.f32.mrf.mxu3 }
 0x155   :  { %v235_v17 = vmul.f32 0.17677669, %v225_v15 }
 0x157   :  { %v251_v18 = vadd.f32 %v243_v16, %v235_v17 }
 0x159   :  { %v274_v19 = vsel %vm252_vm1, %v251_v18, -inf }
 0x15a   :  { %275 = vmax.xlane.f32.xlu2 %v274_v19  ;;  %v160_v14 = vpop.f32.mrf.mxu2 }
 0x15b   :  { %v449_v15 = vpack.c.bf16 %v160_v14, %v158_v13 }
 0x15d   :  { %469 = vmatpush.bf16.msrb.mxu0 %v449_v15  ;;  %568 = vmatpush.bf16.msrb.mxu2 %v449_v15 }
 0x19f   :  { %v255_v33 = vpop.xlane.xlu1 %254 }
 0x1a0   :  { %v277_v36 = vsub.f32 %v244_v47, %v255_v33 }
 0x1a2   :  { %v285_v37 = vmul.f32 1.442695, %v277_v36 }
 0x1a4   :  { %576 = vpow2.f32 %v285_v37 }
 0x1a7   :  { %v258_v42 = vpop.xlane.xlu1 %257 }
 0x1a8   :  { %v278_v45 = vsub.f32 %v875_v53, %v258_v42 }
 0x1aa   :  { %v919_v38 = vpop.eup %576  ;;  %v287_v48 = vmul.f32 1.442695, %v278_v45 }
 0x1ab   :  { %v301_v41 = vsel %vm252_vm1, %v919_v38, 0.0 }
 0x1ac   :  { %302 = vadd.xlane.f32.xlu1 %v301_v41 }
 0x1af   :  { %v264_v57 = vpop.xlane.xlu1 %263 }
 0x1b5   :  { %v267_v43 = vpop.xlane.xlu0 %266 }
 0x1b6   :  { %v281_v44 = vsub.f32 %v248_v63, %v267_v43  ;;  %v280_v63 = vsub.f32 %v882_v58, %v264_v57 }
 0x1b8   :  { %v293_v46 = vmul.f32 1.442695, %v281_v44  ;;  %v291_v2 = vmul.f32 1.442695, %v280_v63 }
 0x1ba   :  { %578 = vpow2.f32 %v293_v46 }
 0x1bb   :  { %580 = vpow2.f32 %v287_v48 }
 0x1bd   :  { %v270_v49 = vpop.xlane.xlu0 %269 }
 0x1be   :  { %v282_v50 = vsub.f32 %v249_v4, %v270_v49 }
 0x1c0   :  { %v924_v51 = vpop.eup %578  ;;  %v295_v47 = vmul.f32 1.442695, %v282_v50 }
 0x1c1   :  { %v313_v52 = vsel %vm252_vm1, %v924_v51, 0.0  ;;  %v928_v56 = vpop.eup %580 }
 0x1c2   :  { %582 = vpow2.f32 %v295_v47  ;;  %314 = vadd.xlane.f32.xlu2 %v313_v52  ;;  %v304_v1 = vsel %vm252_vm1, %v928_v56, 0.0 }
 0x1c5   :  { %v261_v54 = vpop.xlane.xlu0 %260  ;;  %v273_v55 = vpop.xlane.xlu2 %272 }
 0x1c6   :  { %v279_v53 = vsub.f32 %v246_v11, %v261_v54  ;;  %v283_v59 = vsub.f32 %v250_v12, %v273_v55 }
 0x1c8   :  { %v930_v60 = vpop.eup %582  ;;  %v289_v61 = vmul.f32 1.442695, %v279_v53  ;;  %v297_v62 = vmul.f32 1.442695, %v283_v59 }
 0x1c9   :  { %v316_v0 = vsel %vm252_vm1, %v930_v60, 0.0 }
 0x1ca   :  { %584 = vpow2.f32 %v289_v61  ;;  %317 = vadd.xlane.f32.xlu0 %v316_v0  ;;  %305 = vadd.xlane.f32.xlu2 %v304_v1 }
 0x1cb   :  { %586 = vpow2.f32 %v297_v62 }
 0x1cc   :  { %588 = vpow2.f32 %v291_v2 }
 0x1cd   :  { %v276_v3 = vpop.xlane.xlu2 %275 }
 0x1ce   :  { %v284_v4 = vsub.f32 %v251_v18, %v276_v3 }
 0x1d0   :  { %v937_v5 = vpop.eup %584  ;;  %v299_v6 = vmul.f32 1.442695, %v284_v4 }
 0x1d1   :  { %v939_v7 = vpop.eup %586  ;;  %v307_v58 = vsel %vm252_vm1, %v937_v5, 0.0 }
 0x1d2   :  { %590 = vpow2.f32 %v299_v6  ;;  %v319_v8 = vsel %vm252_vm1, %v939_v7, 0.0  ;;  %308 = vadd.xlane.f32.xlu2 %v307_v58  ;;  %v945_v9 = vpop.eup %588 }
 0x1d3   :  { %320 = vadd.xlane.f32.xlu0 %v319_v8  ;;  %v310_v12 = vsel %vm252_vm1, %v945_v9, 0.0 }
 0x1d8   :  { %v947_v10 = vpop.eup %590 }
 0x1d9   :  { %v322_v11 = vsel %vm252_vm1, %v947_v10, 0.0 }
 0x1da   :  { %323 = vadd.xlane.f32.xlu1 %v322_v11 }
 0x1db   :  { %311 = vadd.xlane.f32.xlu0 %v310_v12 }
 0x21f   :  { %v303_v16 = vpop.xlane.xlu1 %302 }
 0x220   :  { %592 = vrcp.f32 %v303_v16  ;;  %v336_v32 = vand.u32 2147483648, %v303_v16  ;;  %vm330_vm3 = vweird.f32 %v303_v16  ;;  %v334_v36 = vand.u32 2147483647, %v303_v16 }
 0x222   :  { %v337_v49 = vor.u32 1.1754944e-38, %v336_v32  ;;  %vm335_vm5 = vcmp.eq.f32.partialorder %v334_v36, 8.507059e+37 }
 0x226   :  { %v593_v17 = vpop.eup %592 }
 0x227   :  { %v326_v19 = vmul.f32 %v593_v17, %v303_v16  ;;  %vm331_vm2 = vweird.f32 %v593_v17 }
 0x228   :  { %vm968_vm4 = vmor %vm330_vm3, %vm331_vm2 }
 0x229   :  { %v327_v20 = vsub.f32 1.0, %v326_v19 }
 0x22b   :  { %v328_v28 = vmul.f32 %v593_v17, %v327_v20 }
 0x22d   :  { %v329_v30 = vadd.f32 %v593_v17, %v328_v28 }
 0x22f   :  { %v333_v44 = vsel %vm968_vm4, %v593_v17, %v329_v30 }
 0x230   :  { %v338_v54 = vsel %vm335_vm5, %v337_v49, %v333_v44 }
 0x231   :  { %v339_v30 = vmul.f32 %v919_v38, %v338_v54 }
 0x235   :  { %v953_v18 = vpop.xlane.xlu2 %314 }
 0x236   :  { %594 = vrcp.f32 %v953_v18  ;;  %vm390_vm7 = vweird.f32 %v953_v18  ;;  %v394_v53 = vand.u32 2147483647, %v953_v18  ;;  %v396_v59 = vand.u32 2147483648, %v953_v18 }
 0x238   :  { %v397_v16 = vor.u32 1.1754944e-38, %v396_v59  ;;  %vm395_vm15 = vcmp.eq.f32.partialorder %v394_v53, 8.507059e+37 }
 0x23c   :  { %v956_v21 = vpop.eup %594 }
 0x23d   :  { %v958_v22 = vpop.xlane.xlu0 %317  ;;  %v960_v25 = vpop.xlane.xlu2 %305  ;;  %v386_v29 = vmul.f32 %v956_v21, %v953_v18  ;;  %vm391_vm6 = vweird.f32 %v956_v21 }
 0x23e   :  { %596 = vrcp.f32 %v958_v22  ;;  %vm345_vm9 = vweird.f32 %v960_v25  ;;  %v351_v61 = vand.u32 2147483648, %v960_v25  ;;  %vm994_vm10 = vmor %vm390_vm7, %vm391_vm6  ;;  %v349_v2 = vand.u32 2147483647, %v960_v25 }
 0x23f   :  { %598 = vrcp.f32 %v960_v25  ;;  %v387_v31 = vsub.f32 1.0, %v386_v29  ;;  %vm405_vm12 = vweird.f32 %v958_v22  ;;  %v409_v4 = vand.u32 2147483647, %v958_v22 }
 0x240   :  { %v411_v6 = vand.u32 2147483648, %v958_v22  ;;  %v352_v18 = vor.u32 1.1754944e-38, %v351_v61  ;;  %vm350_vm2 = vcmp.eq.f32.partialorder %v349_v2, 8.507059e+37 }
 0x241   :  { %v388_v45 = vmul.f32 %v956_v21, %v387_v31  ;;  %vm410_vm3 = vcmp.eq.f32.partialorder %v409_v4, 8.507059e+37 }
 0x243   :  { %v389_v55 = vadd.f32 %v956_v21, %v388_v45 }
 0x244   :  { %v966_v33 = vpop.eup %596 }
 0x245   :  { %v599_v37 = vpop.eup %598  ;;  %v401_v42 = vmul.f32 %v966_v33, %v958_v22  ;;  %v974_v43 = vpop.xlane.xlu2 %308  ;;  %vm406_vm11 = vweird.f32 %v966_v33  ;;  %v393_v12 = vsel %vm994_vm10, %v956_v21, %v389_v55  ;;  %v412_v22 = vor.u32 1.1754944e-38, %v411_v6 }
 0x246   :  { %v341_v46 = vmul.f32 %v599_v37, %v960_v25  ;;  %v980_v48 = vpop.xlane.xlu0 %320  ;;  %600 = vrcp.f32 %v974_v43  ;;  %vm346_vm8 = vweird.f32 %v599_v37  ;;  %vm1027_vm14 = vmor %vm405_vm12, %vm406_vm11  ;;  %v398_v28 = vsel %vm395_vm15, %v397_v16, %v393_v12 }
 0x247   :  { %v402_v50 = vsub.f32 1.0, %v401_v42  ;;  %602 = vrcp.f32 %v980_v48  ;;  %vm1007_vm13 = vmor %vm345_vm9, %vm346_vm8  ;;  %v426_v32 = vand.u32 2147483648, %v980_v48  ;;  %vm420_vm4 = vweird.f32 %v980_v48 }
 0x248   :  { %v342_v47 = vsub.f32 1.0, %v341_v46  ;;  %v424_v46 = vand.u32 2147483647, %v980_v48  ;;  %vm360_vm5 = vweird.f32 %v974_v43 }
 0x249   :  { %v403_v52 = vmul.f32 %v966_v33, %v402_v50  ;;  %v427_v50 = vor.u32 1.1754944e-38, %v426_v32 }
 0x24a   :  { %v343_v57 = vmul.f32 %v599_v37, %v342_v47  ;;  %v366_v47 = vand.u32 2147483648, %v974_v43 }
 0x24b   :  { %v404_v0 = vadd.f32 %v966_v33, %v403_v52 }
 0x24c   :  { %v992_v62 = vpop.eup %600  ;;  %v344_v1 = vadd.f32 %v599_v37, %v343_v57  ;;  %v367_v4 = vor.u32 1.1754944e-38, %v366_v47 }
 0x24d   :  { %v1001_v3 = vpop.eup %602  ;;  %v356_v8 = vmul.f32 %v992_v62, %v974_v43  ;;  %v1013_v11 = vpop.xlane.xlu1 %323  ;;  %v408_v20 = vsel %vm1027_vm14, %v966_v33, %v404_v0  ;;  %v399_v33 = vmul.f32 %v924_v51, %v398_v28  ;;  %vm361_vm6 = vweird.f32 %v992_v62 }
 0x24e   :  { %v348_v13 = vsel %vm1007_vm13, %v599_v37, %v344_v1  ;;  %v416_v14 = vmul.f32 %v1001_v3, %v980_v48  ;;  %v1022_v15 = vpop.xlane.xlu0 %311  ;;  %604 = vrcp.f32 %v1013_v11  ;;  %v413_v36 = vsel %vm410_vm3, %v412_v22, %v408_v20  ;;  %vm1058_vm8 = vmor %vm360_vm5, %vm361_vm6  ;;  %v508_v22 = vld [vmem:[%s1123_s6 + $0x10] sm:$0xff] }
 0x24f   :  { %v357_v19 = vsub.f32 1.0, %v356_v8  ;;  %606 = vrcp.f32 %v1022_v15  ;;  %v353_v25 = vsel %vm350_vm2, %v352_v18, %v348_v13  ;;  %v414_v44 = vmul.f32 %v930_v60, %v413_v36 }
 0x250   :  { %v417_v21 = vsub.f32 1.0, %v416_v14  ;;  %v354_v31 = vmul.f32 %v928_v56, %v353_v25  ;;  %v364_v60 = vand.u32 2147483647, %v974_v43  ;;  %vm421_vm7 = vweird.f32 %v1001_v3 }
 0x251   :  { %v358_v29 = vmul.f32 %v992_v62, %v357_v19  ;;  %v447_v51 = vpack.c.bf16 %v414_v44, %v399_v33  ;;  %v441_v57 = vand.u32 2147483648, %v1013_v11  ;;  %v381_v59 = vand.u32 2147483648, %v1022_v15  ;;  %vm1070_vm11 = vmor %vm420_vm4, %vm421_vm7 }
 0x252   :  { %v418_v41 = vmul.f32 %v1001_v3, %v417_v21  ;;  %v445_v42 = vpack.c.bf16 %v354_v31, %v339_v30  ;;  %v439_v63 = vand.u32 2147483647, %v1013_v11  ;;  %v379_v2 = vand.u32 2147483647, %v1022_v15 }
 0x253   :  { %v359_v56 = vadd.f32 %v992_v62, %v358_v29  ;;  %564 = vmatmul.msk.bf16.vlgmr.msrb.gmra.mxu2 %vm252_vm1, %v447_v51  ;;  %vm365_vm12 = vcmp.eq.f32.partialorder %v364_v60, 8.507059e+37  ;;  %vm435_vm13 = vweird.f32 %v1013_v11  ;;  %vm375_vm14 = vweird.f32 %v1022_v15 }
 0x254   :  { %v605_v37 = vpop.eup %604  ;;  %562 = vmatmul.msk.bf16.vlgmr.msrb.gmra.mxu0 %vm252_vm1, %v445_v42  ;;  %v419_v54 = vadd.f32 %v1001_v3, %v418_v41  ;;  %v382_v48 = vor.u32 1.1754944e-38, %v381_v59  ;;  %vm440_vm3 = vcmp.eq.f32.partialorder %v439_v63, 8.507059e+37  ;;  %vm425_vm4 = vcmp.eq.f32.partialorder %v424_v46, 8.507059e+37 }
 0x255   :  { %v607_v45 = vpop.eup %606  ;;  %v431_v38 = vmul.f32 %v605_v37, %v1013_v11  ;;  %vm436_vm9 = vweird.f32 %v605_v37  ;;  %v363_v0 = vsel %vm1058_vm8, %v992_v62, %v359_v56  ;;  %v442_v62 = vor.u32 1.1754944e-38, %v441_v57 }
 0x256   :  { %v371_v49 = vmul.f32 %v607_v45, %v1022_v15  ;;  %vm376_vm10 = vweird.f32 %v607_v45  ;;  %vm437_vm15 = vmor %vm435_vm13, %vm436_vm9  ;;  %v423_v8 = vsel %vm1070_vm11, %v1001_v3, %v419_v54  ;;  %v368_v13 = vsel %vm365_vm12, %v367_v4, %v363_v0 }
 0x257   :  { %v432_v52 = vsub.f32 1.0, %v431_v38  ;;  %vm377_vm2 = vmor %vm375_vm14, %vm376_vm10  ;;  %vm380_vm5 = vcmp.eq.f32.partialorder %v379_v2, 8.507059e+37  ;;  %v428_v11 = vsel %vm425_vm4, %v427_v50, %v423_v8  ;;  %v369_v18 = vmul.f32 %v937_v5, %v368_v13  ;;  %v509_v5 = vld [vmem:[%s1123_s6 + $0x18] sm:$0xff] }
 0x258   :  { %v372_v55 = vsub.f32 1.0, %v371_v49  ;;  %v429_v3 = vmul.f32 %v939_v7, %v428_v11  ;;  %v511_v25 = vpack.c.bf16 %v509_v5, %v508_v22  ;;  %v507_v7 = vld [vmem:[%s1123_s6 + $0x8] sm:$0xff] }
 0x259   :  { %v433_v61 = vmul.f32 %v605_v37, %v432_v52 }
 0x25a   :  { %v373_v1 = vmul.f32 %v607_v45, %v372_v55  ;;  %525 = vmatpush.bf16.msra.mxu1 %v511_v25 }
 0x25b   :  { %v434_v6 = vadd.f32 %v605_v37, %v433_v61 }
 0x25c   :  { %v374_v58 = vadd.f32 %v607_v45, %v373_v1 }
 0x25d   :  { %v438_v12 = vsel %vm437_vm15, %v605_v37, %v434_v6 }
 0x25e   :  { %v378_v14 = vsel %vm377_vm2, %v607_v45, %v374_v58  ;;  %v443_v16 = vsel %vm440_vm3, %v442_v62, %v438_v12 }
 0x25f   :  { %v383_v17 = vsel %vm380_vm5, %v382_v48, %v378_v14  ;;  %v444_v19 = vmul.f32 %v947_v10, %v443_v16 }
 0x260   :  { %v384_v15 = vmul.f32 %v945_v9, %v383_v17  ;;  %v506_v9 = vld [vmem:[%s1123_s6] sm:$0xff] }
 0x261   :  { %v448_v21 = vpack.c.bf16 %v444_v19, %v429_v3  ;;  %v510_v10 = vpack.c.bf16 %v507_v7, %v506_v9 }
 0x262   :  { %v446_v20 = vpack.c.bf16 %v384_v15, %v369_v18 }
 0x263   :  { %565 = vmatmul.msk.bf16.gmra.mxu2 %vm252_vm1, %v448_v21  ;;  %526 = vmatpush.bf16.msra.mxu1 %v510_v10 }
 0x264   :  { %563 = vmatmul.msk.bf16.gmra.mxu0 %vm252_vm1, %v446_v20 }
 0x2d1   :  { %v471_v28 = vpop.f32.mrf.mxu0 }
 0x2d2   :  { %v491_v33 = vmul.f32 %v471_v28, %v829_v26 }
 0x2d6   :  { %v481_v29 = vpop.f32.mrf.mxu2 }
 0x2d7   :  { %v495_v38 = vmul.f32 %v481_v29, %v850_v35 }
 0x2d9   :  { %v473_v30 = vpop.f32.mrf.mxu0 }
 0x2da   :  { %v492_v44 = vmul.f32 %v473_v30, %v818_v23  ;;  %v575_v23 = vld [vmem:[%s1124_s7] ss:$0 sm:$0xff] }
 0x2de   :  { %v483_v31 = vpop.f32.mrf.mxu2 }
 0x2df   :  { %v496_v56 = vmul.f32 %v483_v31, %v845_v34 }
 0x2e1   :  { %v476_v32 = vpop.f32.mrf.mxu0 }
 0x2e2   :  { %v493_v41 = vmul.f32 %v476_v32, %v834_v27 }
 0x2e4   :  { %v499_v45 = vadd.f32 %v493_v41, %v491_v33 }
 0x2e6   :  { %v486_v36 = vpop.f32.mrf.mxu2  ;;  %v501_v50 = vadd.f32 %v499_v45, %v495_v38 }
 0x2e7   :  { %v497_v49 = vmul.f32 %v486_v36, %v863_v40 }
 0x2e9   :  { %v478_v37 = vpop.f32.mrf.mxu0  ;;  %v503_v27 = vadd.f32 %v501_v50, %v497_v49 }
 0x2ea   :  { %v494_v42 = vmul.f32 %v478_v37, %v823_v24 }
 0x2ec   :  { %v500_v46 = vadd.f32 %v494_v42, %v492_v44 }
 0x2ee   :  { %v488_v51 = vpop.f32.mrf.mxu2  ;;  %v502_v47 = vadd.f32 %v500_v46, %v496_v56 }
 0x2ef   :  { %v498_v60 = vmul.f32 %v488_v51, %v858_v39 }
 0x2f1   :  { %v504_v52 = vadd.f32 %v502_v47, %v498_v60 }
 0x2f3   :  { %v505_v24 = vpack.c.bf16 %v504_v52, %v503_v27 }
 0x2f5   :  { %566 = vmatmul.msk.bf16.vlgmr.msra.gmra.mxu1 %vm93_vm0, %v505_v24 }
 0x372   :  { %v528_v26 = vpop.f32.mrf.mxu1 }
 0x373   :  { %v529_v35 = vadd.f32 %v575_v23, %v528_v26 }
 0x375   :  { %533 = vst.msk [vmem:[#allocation8] sm:$0xff] %vm93_vm0, %v529_v35 }
 0x37a   :  { %v530_v34 = vpop.f32.mrf.mxu1 }
 0x37b   :  { %v531_v39 = vadd.f32 %v575_v23, %v530_v34 }
 0x37d   :  { %534 = vst.msk [vmem:[#allocation8 + $0x8] sm:$0xff] %vm93_vm0, %v531_v39 }
 0x37e   :  { %547 = dma.vmem_to_hbm [thread:$0]  %s540_s3, 256, %s542_s26, [#allocation4], %s711_s21, %s711_s21, %s712_s22  }
 0x37f   :  { %708 = dma.done.wait [#allocation4], 256  }
 0x380   :  { %709 = vsyncadd [#allocation4], 4294967040 }
 0x381   :  { %552 = vsyncpa [#allocation3], 1 }
 0x382   :  { %553 = vsyncpa [#allocation6], 1 }
 0x383   :  { %554 = vsyncpa [#allocation4], 1 }

</bundles_post_ra>
